<compile_context>
chip_gen: v5e
topology: v5e:2x2
jax: 0.10.0
libtpu: 0.0.40
codegen_flags: <defaults>
</compile_context>

<pallas_src>
import numpy as np
import jax
import jax.numpy as jnp
from jax.experimental import pallas as pl
from jax.experimental.pallas import tpu as pltpu

H = 32            # hidden dim
X_DIM = 3         # node feature dim
MSG_DIM = 2       # message / beliefs dim
NEG_SLOPE = 0.01  # nn.LeakyReLU default

SLAB_COLS = 2 * H  # widest packed weight (64)


def _build_slab_layout():
    """Row layout of the single packed weight slab (each block 8-sublane aligned)."""
    entries = [
        ("w_in",    X_DIM,        H),
        ("w_enc_y", MSG_DIM,      H),       # encoder weight rows for y_msg
        ("w_enc_h", H,            H),       # encoder weight rows for h_msg
        ("w1",      3 * H,        2 * H),   # block-diag pack of nn_w1 and n_w1
        ("w2",      2 * H,        2 * H),   # block-diag pack of nn_w2 and n_w2
        ("w_u",     2 * H,        H),       # rows 0:H for h_node, H:2H for aggr_out
        ("w_head",  H,            2 * MSG_DIM),  # lane-stacked decoder + beliefs heads
        ("biases",  8,            2 * H),   # all biases row-packed into one 8x64 block
    ]
    layout, off = {}, 0
    for name, r, c in entries:
        layout[name] = (off, r, c)
        off += ((r + 7) // 8) * 8
    return layout, off


SLAB_LAYOUT, SLAB_ROWS = _build_slab_layout()

# row index inside the packed bias block
_BIAS_ROW = {"b_in": 0, "b_enc": 1, "b1": 2, "b2": 3, "b_u": 4, "b_head": 5}


def _leaky(v):
    return jnp.where(v > 0, v, NEG_SLOPE * v)


def _sigmoid(z):
    # exp / divide go to EUP; exact enough for rtol 1e-4 vs jax.nn.softmax
    return 1.0 / (1.0 + jnp.exp(-z))


def mpnn_kernel(x_ref, hmsg_ref, ymsg_ref, idx_ref, w_ref,
                h_msg_out_ref, y_msg_out_ref, beliefs_out_ref):
    N = x_ref.shape[0]
    E = hmsg_ref.shape[0]
    H2 = 2 * H

    def wblk(name):
        off, r, c = SLAB_LAYOUT[name]
        return w_ref[off:off + r, 0:c]

    dot = lambda a, b: jnp.dot(a, b, preferred_element_type=jnp.float32)

    # ---- weights: static slices of the single packed slab (8-aligned starts) ----
    w_in = wblk("w_in")
    w_enc_y = wblk("w_enc_y")
    w_enc_h = wblk("w_enc_h")
    off1 = SLAB_LAYOUT["w1"][0]
    w1_g = w_ref[off1:off1 + H2, 0:H2]          # rows that multiply [h_node_j | aggr_msgs_j]
    w1_e = w_ref[off1 + H2:off1 + 3 * H, 0:H2]  # rows that multiply enc
    w2 = wblk("w2")
    offu = SLAB_LAYOUT["w_u"][0]
    w_u_h = w_ref[offu:offu + H, 0:H]           # U rows for h_node
    w_u_a = w_ref[offu + H:offu + H2, 0:H]      # U rows for aggr_out
    w_head = wblk("w_head")                     # [H, 4]: cols 0:2 msg decoder, 2:4 beliefs

    boff = SLAB_LAYOUT["biases"][0]
    bias_blk = w_ref[boff:boff + 8, 0:H2]       # one aligned load, then value slices
    b_in = bias_blk[_BIAS_ROW["b_in"]:_BIAS_ROW["b_in"] + 1, 0:H]
    b_enc = bias_blk[_BIAS_ROW["b_enc"]:_BIAS_ROW["b_enc"] + 1, 0:H]
    b1 = bias_blk[_BIAS_ROW["b1"]:_BIAS_ROW["b1"] + 1, 0:H2]
    b2 = bias_blk[_BIAS_ROW["b2"]:_BIAS_ROW["b2"] + 1, 0:H2]
    b_u = bias_blk[_BIAS_ROW["b_u"]:_BIAS_ROW["b_u"] + 1, 0:H]
    b_head = bias_blk[_BIAS_ROW["b_head"]:_BIAS_ROW["b_head"] + 1, 0:2 * MSG_DIM]

    # ---- one-hot gather/scatter masks from the raw [2, E] edge index ----
    idx = idx_ref[...]                                   # [2, E] int32
    src_row = idx[0:1, :]                                # [1, E]
    dst_row = idx[1:2, :]                                # [1, E]
    # The [E, N] gather mask needs src as a COLUMN.  A [1,E]->[E,1] transpose of a
    # sub-tile int vector is a risky relayout, so extract the column with
    # elementwise + lane-reduce ops only (exact for small integer indices).
    ii = jax.lax.broadcasted_iota(jnp.int32, (E, E), 0)
    jj = jax.lax.broadcasted_iota(jnp.int32, (E, E), 1)
    src_col = jnp.sum(jnp.where(ii == jj, src_row.astype(jnp.float32), 0.0),
                      axis=1, keepdims=True).astype(jnp.int32)            # [E, 1]
    # masks emitted directly in the matmul operand dtype (compare + single select)
    gsrc = jnp.where(jax.lax.broadcasted_iota(jnp.int32, (E, N), 1) == src_col,
                     1.0, 0.0)                                            # [E, N]
    sdst = jnp.where(jax.lax.broadcasted_iota(jnp.int32, (N, E), 0) == dst_row,
                     1.0, 0.0)                                            # [N, E]

    # lin_in: h_node = x @ W_in + b_in                                     [N, H]
    h_node = dot(x_ref[...], w_in) + b_in

    # EncoderLayer on cat(y_msg, h_msg) via split weights (no lane concat)  [E, H]
    enc = dot(ymsg_ref[...], w_enc_y) + dot(hmsg_ref[...], w_enc_h) + b_enc

    # scatter-add encoded_msg by destination (edge_index[1])                [N, H]
    aggr_msgs = dot(sdst, enc)

    # one wide gather of cat(h_node, aggr_msgs) by sender index             [E, 2H]
    gathered = dot(gsrc, jnp.concatenate([h_node, aggr_msgs], axis=1))

    # fused N_node / N MLPs (block-diag weights, split along the input rows so the
    # feat1 = [gathered | enc] lane-concat is never materialized)
    t1 = _leaky(dot(gathered, w1_g) + dot(enc, w1_e) + b1)                 # [E, 2H]
    t2 = _leaky(dot(t1, w2) + b2)                                          # [E, 2H]
    m = t2[:, 0:H] + t2[:, H:H2]                                           # [E, H]  (new h_msg)

    # aggregate ('add') by destination, then update U via split weights    [N, H]
    aggr_out = dot(sdst, m)
    h_node_new = _leaky(dot(h_node, w_u_h) + dot(aggr_out, w_u_a) + b_u)

    # both 2-class softmax heads fused into one matmul + one sigmoid
    # (softmax([a,b]) == [sigmoid(a-b), sigmoid(b-a)]; +/- folded into w_head)
    stacked = jnp.concatenate([m, h_node_new], axis=0)                     # [E+N, H]
    heads = _sigmoid(dot(stacked, w_head) + b_head)                        # [E+N, 4]

    h_msg_out_ref[...] = m
    y_msg_out_ref[...] = heads[0:E, 0:MSG_DIM]
    beliefs_out_ref[...] = heads[E:E + N, MSG_DIM:2 * MSG_DIM]


def pack_params(p):
    """Pack all weights/biases into one padded f32 slab (numpy, setup-time only).

    Also performs the algebraic refactors used by the kernel:
      - encoder weight split into y_msg / h_msg row blocks,
      - block-diagonal packing of the N_node / N MLP layers,
      - softmax-to-sigmoid transform of the two 2-class decoder heads, whose
        weights are then lane-stacked into a single [H, 4] head weight,
      - all biases row-packed into one 8x64 block.
    """
    H2, H3 = 2 * H, 3 * H
    w1 = np.zeros((H3, H2), np.float32)
    w1[0:H, 0:H] = np.asarray(p["nn_w1"])
    w1[H:H3, H:H2] = np.asarray(p["n_w1"])
    b1 = np.concatenate([np.asarray(p["nn_b1"]), np.asarray(p["n_b1"])], axis=1)

    w2 = np.zeros((H2, H2), np.float32)
    w2[0:H, 0:H] = np.asarray(p["nn_w2"])
    w2[H:H2, H:H2] = np.asarray(p["n_w2"])
    b2 = np.concatenate([np.asarray(p["nn_b2"]), np.asarray(p["n_b2"])], axis=1)

    # softmax([a,b]) == [sigmoid(a-b), sigmoid(b-a)]  ->  fold +/- into the weights
    D = np.array([[1.0, -1.0], [-1.0, 1.0]], np.float32)
    w_head = np.concatenate([np.asarray(p["w_dec"]) @ D, np.asarray(p["w_bel"]) @ D], axis=1)
    b_head = np.concatenate([np.asarray(p["b_dec"]) @ D, np.asarray(p["b_bel"]) @ D], axis=1)

    w_enc = np.asarray(p["w_enc"], np.float32)

    slab = np.zeros((SLAB_ROWS, SLAB_COLS), np.float32)

    def put(name, arr):
        off, r, c = SLAB_LAYOUT[name]
        slab[off:off + r, 0:c] = np.asarray(arr, np.float32)

    put("w_in", p["w_in"])
    put("w_enc_y", w_enc[0:MSG_DIM, :])
    put("w_enc_h", w_enc[MSG_DIM:, :])
    put("w1", w1)
    put("w2", w2)
    put("w_u", p["u_w"])
    put("w_head", w_head)

    boff = SLAB_LAYOUT["biases"][0]
    for name, arr in (("b_in", p["b_in"]), ("b_enc", p["b_enc"]), ("b1", b1),
                      ("b2", b2), ("b_u", p["u_b"]), ("b_head", b_head)):
        row = np.asarray(arr, np.float32).reshape(-1)
        slab[boff + _BIAS_ROW[name], 0:row.shape[0]] = row
    return jnp.asarray(slab)


def mpnn_sender_aggr(x, edge_index, h_msg, y_msg, w_slab):
    """Wrapper is pure plumbing: no XLA glue ops, just the pallas_call."""
    N = x.shape[0]
    E = h_msg.shape[0]

    # astype calls are no-ops (elided) when the caller already provides f32 / int32
    inputs = (
        x.astype(jnp.float32),
        h_msg.astype(jnp.float32),
        y_msg.astype(jnp.float32),
        edge_index.astype(jnp.int32),   # raw [2, E]; sliced inside the kernel
        w_slab,
    )

    # TODO(synk): for large E/N, tile the node/output axis as the outer "parallel"
    # grid axis (disjoint N rows per v7x TensorCore, no cross-core scatter conflict)
    # and the edge axis as the inner "arbitrary" reduction axis with a pl.when-guarded
    # VMEM accumulator; size the mask tiles for v7x's 64 MiB VMEM and keep the weight
    # slab's index_map constant so it is fetched once.  At these demo shapes a single
    # grid step is optimal.
    in_specs = [pl.BlockSpec(a.shape, lambda i, nd=a.ndim: (0,) * nd) for a in inputs]
    out_shape = (
        jax.ShapeDtypeStruct((E, H), jnp.float32),        # h_msg (per-edge message)
        jax.ShapeDtypeStruct((E, MSG_DIM), jnp.float32),  # y_msg
        jax.ShapeDtypeStruct((N, MSG_DIM), jnp.float32),  # beliefs for every node
    )
    out_specs = tuple(
        pl.BlockSpec(s.shape, lambda i, nd=len(s.shape): (0,) * nd) for s in out_shape
    )

    compiler_params = None
    _CP = getattr(pltpu, "CompilerParams", None)
    if _CP is not None:
        # explicit VMEM budget (safe on v5e/v6e/v7x; actual footprint is <1 MiB here)
        compiler_params = _CP(dimension_semantics=("arbitrary",),
                              vmem_limit_bytes=32 * 1024 * 1024)

    return pl.pallas_call(
        mpnn_kernel,
        grid=(1,),
        in_specs=in_specs,
        out_specs=out_specs,
        out_shape=out_shape,
        compiler_params=compiler_params,
    )(*inputs)


def init_params(key):
    """Deterministic nn.Linear-style init (uniform +/- 1/sqrt(fan_in))."""
    ks = jax.random.split(key, 9)

    def lin(k, fan_in, fan_out):
        k1, k2 = jax.random.split(k)
        bound = 1.0 / np.sqrt(fan_in)
        w = jax.random.uniform(k1, (fan_in, fan_out), jnp.float32, -bound, bound)
        b = jax.random.uniform(k2, (1, fan_out), jnp.float32, -bound, bound)
        return w, b

    p = {}
    p["w_in"], p["b_in"] = lin(ks[0], X_DIM, H)
    p["w_enc"], p["b_enc"] = lin(ks[1], MSG_DIM + H, H)   # Linear(msg_dim + h_dim, h_dim)
    p["nn_w1"], p["nn_b1"] = lin(ks[2], H, H)             # N_node layer 1
    p["nn_w2"], p["nn_b2"] = lin(ks[3], H, H)             # N_node layer 2
    p["n_w1"], p["n_b1"] = lin(ks[4], 2 * H, H)           # N layer 1
    p["n_w2"], p["n_b2"] = lin(ks[5], H, H)               # N layer 2
    p["u_w"], p["u_b"] = lin(ks[6], 2 * H, H)             # U
    p["w_dec"], p["b_dec"] = lin(ks[7], H, MSG_DIM)       # MessageDecoderLayer
    p["w_bel"], p["b_bel"] = lin(ks[8], H, MSG_DIM)       # BeliefsDecoderLayer
    return p


def reference(x, edge_index, h_msg, y_msg, p):
    """Pure-JAX reference mirroring the PyTorch forward pass."""
    src, dst = edge_index[0], edge_index[1]
    N = x.shape[0]
    h_node = x @ p["w_in"] + p["b_in"]
    enc = jnp.concatenate([y_msg, h_msg], axis=1) @ p["w_enc"] + p["b_enc"]
    aggr_msgs = jax.ops.segment_sum(enc, dst, num_segments=N)
    t = _leaky(h_node[src] @ p["nn_w1"] + p["nn_b1"])
    n_node_out = _leaky(t @ p["nn_w2"] + p["nn_b2"])
    t = _leaky(jnp.concatenate([aggr_msgs[src], enc], axis=1) @ p["n_w1"] + p["n_b1"])
    n_out = _leaky(t @ p["n_w2"] + p["n_b2"])
    m = n_node_out + n_out
    aggr_out = jax.ops.segment_sum(m, dst, num_segments=N)
    h_node_new = _leaky(jnp.concatenate([h_node, aggr_out], axis=1) @ p["u_w"] + p["u_b"])
    y_msg_out = jax.nn.softmax(m @ p["w_dec"] + p["b_dec"], axis=-1)
    beliefs = jax.nn.softmax(h_node_new @ p["w_bel"] + p["b_bel"], axis=-1)
    return m, y_msg_out, beliefs


if __name__ == "__main__":
    key = jax.random.PRNGKey(0)
    kx, kmsg, kymsg, kp, kedge = jax.random.split(key, 5)

    N, E = 8, 16
    # node features: column 0 is the "variable node" flag in {0, 1}
    flag = (jnp.arange(N) % 2).astype(jnp.float32)[:, None]
    rest = jax.random.normal(kx, (N, X_DIM - 1), jnp.float32)
    x = jnp.concatenate([flag, rest], axis=1)                          # [N, 3]
    edge_index = jax.random.randint(kedge, (2, E), 0, N)               # [2, E] int32
    h_msg = jax.random.normal(kmsg, (E, H), jnp.float32)               # [E, 32]
    y_msg = jax.nn.softmax(jax.random.normal(kymsg, (E, MSG_DIM)), -1) # [E, 2]
    params = init_params(kp)
    w_slab = pack_params(params)                                       # [SLAB_ROWS, 64]

    h_msg_out, y_msg_out, beliefs_all = mpnn_sender_aggr(x, edge_index, h_msg, y_msg, w_slab)
    jax.block_until_ready((h_msg_out, y_msg_out, beliefs_all))

    # correctness check against pure-JAX reference
    r_h, r_y, r_b = reference(x, edge_index, h_msg, y_msg, params)
    np.testing.assert_allclose(np.asarray(h_msg_out), np.asarray(r_h), rtol=1e-4, atol=1e-4)
    np.testing.assert_allclose(np.asarray(y_msg_out), np.asarray(r_y), rtol=1e-4, atol=1e-4)
    np.testing.assert_allclose(np.asarray(beliefs_all), np.asarray(r_b), rtol=1e-4, atol=1e-4)

    # TODO(synk): boolean-mask row selection (data-dependent output shape) has no
    # static-shape Pallas equivalent; beliefs are computed for all nodes in-kernel and
    # the `x[:,0] == 1` rows are selected here (same values, softmax is row-wise).
    mask = np.asarray(x[:, 0] == 1)
    y_beliefs = np.asarray(beliefs_all)[mask]

    print("KERNEL_OK")
</pallas_src>

<mosaic_0001>
module attributes {stable_mosaic.version = 11 : i64} {
  func.func @mpnn_kernel(%arg0: i32, %arg1: memref<8x3xf32, #tpu.memory_space<vmem>>, %arg2: memref<16x32xf32, #tpu.memory_space<vmem>>, %arg3: memref<16x2xf32, #tpu.memory_space<vmem>>, %arg4: memref<2x16xi32, #tpu.memory_space<vmem>>, %arg5: memref<312x64xf32, #tpu.memory_space<vmem>>, %arg6: memref<16x32xf32, #tpu.memory_space<vmem>>, %arg7: memref<16x2xf32, #tpu.memory_space<vmem>>, %arg8: memref<8x2xf32, #tpu.memory_space<vmem>>) attributes {dimension_semantics = [#tpu.dimension_semantics<arbitrary>], iteration_bounds = array<i64: 1>, scalar_prefetch = 0 : i64, scratch_operands = 0 : i64, tpu.core_type = #tpu.core_type<tc>, window_params = [{pipeline_mode = #tpu.pipeline_mode<synchronous>, transform_indices = @transform_0, window_bounds = array<i64: 8, 3>}, {pipeline_mode = #tpu.pipeline_mode<synchronous>, transform_indices = @transform_1, window_bounds = array<i64: 16, 32>}, {pipeline_mode = #tpu.pipeline_mode<synchronous>, transform_indices = @transform_2, window_bounds = array<i64: 16, 2>}, {pipeline_mode = #tpu.pipeline_mode<synchronous>, transform_indices = @transform_3, window_bounds = array<i64: 2, 16>}, {pipeline_mode = #tpu.pipeline_mode<synchronous>, transform_indices = @transform_4, window_bounds = array<i64: 312, 64>}, {pipeline_mode = #tpu.pipeline_mode<synchronous>, transform_indices = @transform_5, window_bounds = array<i64: 16, 32>}, {pipeline_mode = #tpu.pipeline_mode<synchronous>, transform_indices = @transform_6, window_bounds = array<i64: 16, 2>}, {pipeline_mode = #tpu.pipeline_mode<synchronous>, transform_indices = @transform_7, window_bounds = array<i64: 8, 2>}]} {
    %c0 = arith.constant 0 : index
    %c0_0 = arith.constant 0 : index
    %0 = vector.load %arg5[%c0, %c0_0] : memref<312x64xf32, #tpu.memory_space<vmem>>, vector<3x32xf32>
    %c8 = arith.constant 8 : index
    %c0_1 = arith.constant 0 : index
    %1 = vector.load %arg5[%c8, %c0_1] : memref<312x64xf32, #tpu.memory_space<vmem>>, vector<2x32xf32>
    %c16 = arith.constant 16 : index
    %c0_2 = arith.constant 0 : index
    %2 = vector.load %arg5[%c16, %c0_2] : memref<312x64xf32, #tpu.memory_space<vmem>>, vector<32x32xf32>
    %c48 = arith.constant 48 : index
    %c0_3 = arith.constant 0 : index
    %3 = vector.load %arg5[%c48, %c0_3] : memref<312x64xf32, #tpu.memory_space<vmem>>, vector<64x64xf32>
    %c112 = arith.constant 112 : index
    %c0_4 = arith.constant 0 : index
    %4 = vector.load %arg5[%c112, %c0_4] : memref<312x64xf32, #tpu.memory_space<vmem>>, vector<32x64xf32>
    %c144 = arith.constant 144 : index
    %c0_5 = arith.constant 0 : index
    %5 = vector.load %arg5[%c144, %c0_5] : memref<312x64xf32, #tpu.memory_space<vmem>>, vector<64x64xf32>
    %c208 = arith.constant 208 : index
    %c0_6 = arith.constant 0 : index
    %6 = vector.load %arg5[%c208, %c0_6] : memref<312x64xf32, #tpu.memory_space<vmem>>, vector<32x32xf32>
    %c240 = arith.constant 240 : index
    %c0_7 = arith.constant 0 : index
    %7 = vector.load %arg5[%c240, %c0_7] : memref<312x64xf32, #tpu.memory_space<vmem>>, vector<32x32xf32>
    %c272 = arith.constant 272 : index
    %c0_8 = arith.constant 0 : index
    %8 = vector.load %arg5[%c272, %c0_8] : memref<312x64xf32, #tpu.memory_space<vmem>>, vector<32x4xf32>
    %c304 = arith.constant 304 : index
    %c0_9 = arith.constant 0 : index
    %9 = vector.load %arg5[%c304, %c0_9] : memref<312x64xf32, #tpu.memory_space<vmem>>, vector<8x64xf32>
    %10 = vector.extract_strided_slice %9 {offsets = [0, 0], sizes = [1, 32], strides = [1, 1]} : vector<8x64xf32> to vector<1x32xf32>
    %11 = vector.extract_strided_slice %9 {offsets = [1, 0], sizes = [1, 32], strides = [1, 1]} : vector<8x64xf32> to vector<1x32xf32>
    %12 = vector.extract_strided_slice %9 {offsets = [2, 0], sizes = [1, 64], strides = [1, 1]} : vector<8x64xf32> to vector<1x64xf32>
    %13 = vector.extract_strided_slice %9 {offsets = [3, 0], sizes = [1, 64], strides = [1, 1]} : vector<8x64xf32> to vector<1x64xf32>
    %14 = vector.extract_strided_slice %9 {offsets = [4, 0], sizes = [1, 32], strides = [1, 1]} : vector<8x64xf32> to vector<1x32xf32>
    %15 = vector.extract_strided_slice %9 {offsets = [5, 0], sizes = [1, 4], strides = [1, 1]} : vector<8x64xf32> to vector<1x4xf32>
    %c0_10 = arith.constant 0 : index
    %c0_11 = arith.constant 0 : index
    %16 = vector.load %arg4[%c0_10, %c0_11] : memref<2x16xi32, #tpu.memory_space<vmem>>, vector<2x16xi32>
    %17 = vector.extract_strided_slice %16 {offsets = [0, 0], sizes = [1, 16], strides = [1, 1]} : vector<2x16xi32> to vector<1x16xi32>
    %18 = vector.extract_strided_slice %16 {offsets = [1, 0], sizes = [1, 16], strides = [1, 1]} : vector<2x16xi32> to vector<1x16xi32>
    %19 = tpu.iota {dimensions = array<i32: 0>} : vector<16x16xi32>
    %20 = tpu.iota {dimensions = array<i32: 1>} : vector<16x16xi32>
    %21 = arith.cmpi eq, %19, %20 : vector<16x16xi32>
    %22 = arith.sitofp %17 : vector<1x16xi32> to vector<1x16xf32>
    %cst = arith.constant 0.000000e+00 : f32
    %23 = vector.shape_cast %22 : vector<1x16xf32> to vector<1x16xf32>
    %24 = vector.broadcast %23 : vector<1x16xf32> to vector<16x16xf32>
    %25 = vector.broadcast %cst : f32 to vector<16x16xf32>
    %26 = arith.select %21, %24, %25 : vector<16x16xi1>, vector<16x16xf32>
    %cst_12 = arith.constant dense<0.000000e+00> : vector<16xf32>
    %27 = vector.multi_reduction <add>, %26, %cst_12 [1] : vector<16x16xf32> to vector<16xf32>
    %28 = vector.shape_cast %27 : vector<16xf32> to vector<16x1xf32>
    %29 = arith.fptosi %28 : vector<16x1xf32> to vector<16x1xi32>
    %30 = tpu.iota {dimensions = array<i32: 1>} : vector<16x8xi32>
    %31 = vector.broadcast %29 : vector<16x1xi32> to vector<16x8xi32>
    %32 = arith.cmpi eq, %30, %31 : vector<16x8xi32>
    %cst_13 = arith.constant 1.000000e+00 : f32
    %cst_14 = arith.constant 0.000000e+00 : f32
    %33 = vector.broadcast %cst_13 : f32 to vector<16x8xf32>
    %34 = vector.broadcast %cst_14 : f32 to vector<16x8xf32>
    %35 = arith.select %32, %33, %34 : vector<16x8xi1>, vector<16x8xf32>
    %36 = tpu.iota {dimensions = array<i32: 0>} : vector<8x16xi32>
    %37 = vector.broadcast %18 : vector<1x16xi32> to vector<8x16xi32>
    %38 = arith.cmpi eq, %36, %37 : vector<8x16xi32>
    %cst_15 = arith.constant 1.000000e+00 : f32
    %cst_16 = arith.constant 0.000000e+00 : f32
    %39 = vector.broadcast %cst_15 : f32 to vector<8x16xf32>
    %40 = vector.broadcast %cst_16 : f32 to vector<8x16xf32>
    %41 = arith.select %38, %39, %40 : vector<8x16xi1>, vector<8x16xf32>
    %c0_17 = arith.constant 0 : index
    %c0_18 = arith.constant 0 : index
    %42 = vector.load %arg1[%c0_17, %c0_18] : memref<8x3xf32, #tpu.memory_space<vmem>>, vector<8x3xf32>
    %cst_19 = arith.constant dense<0.000000e+00> : vector<8x32xf32>
    %43 = tpu.matmul %42, %0, %cst_19 {dimension_numbers = #tpu.dot_dimension_numbers<[1], [0], [0], [1], [0, 0, 1, 1], [], []>} : vector<8x3xf32>, vector<3x32xf32>, vector<8x32xf32> -> vector<8x32xf32>
    %44 = vector.broadcast %10 : vector<1x32xf32> to vector<8x32xf32>
    %45 = arith.addf %43, %44 : vector<8x32xf32>
    %c0_20 = arith.constant 0 : index
    %c0_21 = arith.constant 0 : index
    %46 = vector.load %arg3[%c0_20, %c0_21] : memref<16x2xf32, #tpu.memory_space<vmem>>, vector<16x2xf32>
    %cst_22 = arith.constant dense<0.000000e+00> : vector<16x32xf32>
    %47 = tpu.matmul %46, %1, %cst_22 {dimension_numbers = #tpu.dot_dimension_numbers<[1], [0], [0], [1], [0, 0, 1, 1], [], []>} : vector<16x2xf32>, vector<2x32xf32>, vector<16x32xf32> -> vector<16x32xf32>
    %c0_23 = arith.constant 0 : index
    %c0_24 = arith.constant 0 : index
    %48 = vector.load %arg2[%c0_23, %c0_24] : memref<16x32xf32, #tpu.memory_space<vmem>>, vector<16x32xf32>
    %cst_25 = arith.constant dense<0.000000e+00> : vector<16x32xf32>
    %49 = tpu.matmul %48, %2, %cst_25 {dimension_numbers = #tpu.dot_dimension_numbers<[1], [0], [0], [1], [0, 0, 1, 1], [], []>} : vector<16x32xf32>, vector<32x32xf32>, vector<16x32xf32> -> vector<16x32xf32>
    %50 = arith.addf %47, %49 : vector<16x32xf32>
    %51 = vector.broadcast %11 : vector<1x32xf32> to vector<16x32xf32>
    %52 = arith.addf %50, %51 : vector<16x32xf32>
    %cst_26 = arith.constant dense<0.000000e+00> : vector<8x32xf32>
    %53 = tpu.matmul %41, %52, %cst_26 {dimension_numbers = #tpu.dot_dimension_numbers<[1], [0], [0], [1], [0, 0, 1, 1], [], []>} : vector<8x16xf32>, vector<16x32xf32>, vector<8x32xf32> -> vector<8x32xf32>
    %54 = tpu.concatenate %45, %53 in 1 : vector<8x32xf32>, vector<8x32xf32> -> vector<8x64xf32>
    %cst_27 = arith.constant dense<0.000000e+00> : vector<16x64xf32>
    %55 = tpu.matmul %35, %54, %cst_27 {dimension_numbers = #tpu.dot_dimension_numbers<[1], [0], [0], [1], [0, 0, 1, 1], [], []>} : vector<16x8xf32>, vector<8x64xf32>, vector<16x64xf32> -> vector<16x64xf32>
    %cst_28 = arith.constant dense<0.000000e+00> : vector<16x64xf32>
    %56 = tpu.matmul %55, %3, %cst_28 {dimension_numbers = #tpu.dot_dimension_numbers<[1], [0], [0], [1], [0, 0, 1, 1], [], []>} : vector<16x64xf32>, vector<64x64xf32>, vector<16x64xf32> -> vector<16x64xf32>
    %cst_29 = arith.constant dense<0.000000e+00> : vector<16x64xf32>
    %57 = tpu.matmul %52, %4, %cst_29 {dimension_numbers = #tpu.dot_dimension_numbers<[1], [0], [0], [1], [0, 0, 1, 1], [], []>} : vector<16x32xf32>, vector<32x64xf32>, vector<16x64xf32> -> vector<16x64xf32>
    %58 = arith.addf %56, %57 : vector<16x64xf32>
    %59 = vector.broadcast %12 : vector<1x64xf32> to vector<16x64xf32>
    %60 = arith.addf %58, %59 : vector<16x64xf32>
    %cst_30 = arith.constant 0.000000e+00 : f32
    %61 = vector.broadcast %cst_30 : f32 to vector<16x64xf32>
    %62 = arith.cmpf ogt, %60, %61 : vector<16x64xf32>
    %cst_31 = arith.constant 0.00999999977 : f32
    %63 = vector.broadcast %cst_31 : f32 to vector<16x64xf32>
    %64 = arith.mulf %63, %60 : vector<16x64xf32>
    %65 = arith.select %62, %60, %64 : vector<16x64xi1>, vector<16x64xf32>
    %cst_32 = arith.constant dense<0.000000e+00> : vector<16x64xf32>
    %66 = tpu.matmul %65, %5, %cst_32 {dimension_numbers = #tpu.dot_dimension_numbers<[1], [0], [0], [1], [0, 0, 1, 1], [], []>} : vector<16x64xf32>, vector<64x64xf32>, vector<16x64xf32> -> vector<16x64xf32>
    %67 = vector.broadcast %13 : vector<1x64xf32> to vector<16x64xf32>
    %68 = arith.addf %66, %67 : vector<16x64xf32>
    %cst_33 = arith.constant 0.000000e+00 : f32
    %69 = vector.broadcast %cst_33 : f32 to vector<16x64xf32>
    %70 = arith.cmpf ogt, %68, %69 : vector<16x64xf32>
    %cst_34 = arith.constant 0.00999999977 : f32
    %71 = vector.broadcast %cst_34 : f32 to vector<16x64xf32>
    %72 = arith.mulf %71, %68 : vector<16x64xf32>
    %73 = arith.select %70, %68, %72 : vector<16x64xi1>, vector<16x64xf32>
    %74 = vector.extract_strided_slice %73 {offsets = [0, 0], sizes = [16, 32], strides = [1, 1]} : vector<16x64xf32> to vector<16x32xf32>
    %75 = vector.extract_strided_slice %73 {offsets = [0, 32], sizes = [16, 32], strides = [1, 1]} : vector<16x64xf32> to vector<16x32xf32>
    %76 = arith.addf %74, %75 : vector<16x32xf32>
    %cst_35 = arith.constant dense<0.000000e+00> : vector<8x32xf32>
    %77 = tpu.matmul %41, %76, %cst_35 {dimension_numbers = #tpu.dot_dimension_numbers<[1], [0], [0], [1], [0, 0, 1, 1], [], []>} : vector<8x16xf32>, vector<16x32xf32>, vector<8x32xf32> -> vector<8x32xf32>
    %cst_36 = arith.constant dense<0.000000e+00> : vector<8x32xf32>
    %78 = tpu.matmul %45, %6, %cst_36 {dimension_numbers = #tpu.dot_dimension_numbers<[1], [0], [0], [1], [0, 0, 1, 1], [], []>} : vector<8x32xf32>, vector<32x32xf32>, vector<8x32xf32> -> vector<8x32xf32>
    %cst_37 = arith.constant dense<0.000000e+00> : vector<8x32xf32>
    %79 = tpu.matmul %77, %7, %cst_37 {dimension_numbers = #tpu.dot_dimension_numbers<[1], [0], [0], [1], [0, 0, 1, 1], [], []>} : vector<8x32xf32>, vector<32x32xf32>, vector<8x32xf32> -> vector<8x32xf32>
    %80 = arith.addf %78, %79 : vector<8x32xf32>
    %81 = vector.broadcast %14 : vector<1x32xf32> to vector<8x32xf32>
    %82 = arith.addf %80, %81 : vector<8x32xf32>
    %cst_38 = arith.constant 0.000000e+00 : f32
    %83 = vector.broadcast %cst_38 : f32 to vector<8x32xf32>
    %84 = arith.cmpf ogt, %82, %83 : vector<8x32xf32>
    %cst_39 = arith.constant 0.00999999977 : f32
    %85 = vector.broadcast %cst_39 : f32 to vector<8x32xf32>
    %86 = arith.mulf %85, %82 : vector<8x32xf32>
    %87 = arith.select %84, %82, %86 : vector<8x32xi1>, vector<8x32xf32>
    %88 = tpu.concatenate %76, %87 in 0 : vector<16x32xf32>, vector<8x32xf32> -> vector<24x32xf32>
    %cst_40 = arith.constant dense<0.000000e+00> : vector<24x4xf32>
    %89 = tpu.matmul %88, %8, %cst_40 {dimension_numbers = #tpu.dot_dimension_numbers<[1], [0], [0], [1], [0, 0, 1, 1], [], []>} : vector<24x32xf32>, vector<32x4xf32>, vector<24x4xf32> -> vector<24x4xf32>
    %90 = vector.broadcast %15 : vector<1x4xf32> to vector<24x4xf32>
    %91 = arith.addf %89, %90 : vector<24x4xf32>
    %cst_41 = arith.constant 0.000000e+00 : f32
    %92 = vector.broadcast %cst_41 : f32 to vector<24x4xf32>
    %93 = arith.subf %92, %91 : vector<24x4xf32>
    %94 = math.exp %93 : vector<24x4xf32>
    %cst_42 = arith.constant 1.000000e+00 : f32
    %95 = vector.broadcast %cst_42 : f32 to vector<24x4xf32>
    %96 = arith.addf %95, %94 : vector<24x4xf32>
    %cst_43 = arith.constant 1.000000e+00 : f32
    %97 = vector.broadcast %cst_43 : f32 to vector<24x4xf32>
    %98 = arith.divf %97, %96 : vector<24x4xf32>
    %c0_44 = arith.constant 0 : index
    %c0_45 = arith.constant 0 : index
    %99 = vector.load %arg6[%c0_44, %c0_45] : memref<16x32xf32, #tpu.memory_space<vmem>>, vector<16x32xf32>
    tpu.vector_store %arg6[%c0_44, %c0_45], %76 {strides = array<i32>} : memref<16x32xf32, #tpu.memory_space<vmem>>, vector<16x32xf32>,
    %100 = vector.extract_strided_slice %98 {offsets = [0, 0], sizes = [16, 2], strides = [1, 1]} : vector<24x4xf32> to vector<16x2xf32>
    %c0_46 = arith.constant 0 : index
    %c0_47 = arith.constant 0 : index
    %101 = vector.load %arg7[%c0_46, %c0_47] : memref<16x2xf32, #tpu.memory_space<vmem>>, vector<16x2xf32>
    tpu.vector_store %arg7[%c0_46, %c0_47], %100 {strides = array<i32>} : memref<16x2xf32, #tpu.memory_space<vmem>>, vector<16x2xf32>,
    %102 = vector.extract_strided_slice %98 {offsets = [16, 2], sizes = [8, 2], strides = [1, 1]} : vector<24x4xf32> to vector<8x2xf32>
    %c0_48 = arith.constant 0 : index
    %c0_49 = arith.constant 0 : index
    %103 = vector.load %arg8[%c0_48, %c0_49] : memref<8x2xf32, #tpu.memory_space<vmem>>, vector<8x2xf32>
    tpu.vector_store %arg8[%c0_48, %c0_49], %102 {strides = array<i32>} : memref<8x2xf32, #tpu.memory_space<vmem>>, vector<8x2xf32>,
    return
  }
  func.func @transform_0(%arg0: i32) -> (i32, i32) {
    %c0_i32 = arith.constant 0 : i32
    %c0_i32_0 = arith.constant 0 : i32
    %c0_i32_1 = arith.constant 0 : i32
    return %c0_i32, %c0_i32_0 : i32, i32
  }
  func.func @transform_1(%arg0: i32) -> (i32, i32) {
    %c0_i32 = arith.constant 0 : i32
    %c0_i32_0 = arith.constant 0 : i32
    %c0_i32_1 = arith.constant 0 : i32
    return %c0_i32, %c0_i32_0 : i32, i32
  }
  func.func @transform_2(%arg0: i32) -> (i32, i32) {
    %c0_i32 = arith.constant 0 : i32
    %c0_i32_0 = arith.constant 0 : i32
    %c0_i32_1 = arith.constant 0 : i32
    return %c0_i32, %c0_i32_0 : i32, i32
  }
  func.func @transform_3(%arg0: i32) -> (i32, i32) {
    %c0_i32 = arith.constant 0 : i32
    %c0_i32_0 = arith.constant 0 : i32
    %c0_i32_1 = arith.constant 0 : i32
    return %c0_i32, %c0_i32_0 : i32, i32
  }
  func.func @transform_4(%arg0: i32) -> (i32, i32) {
    %c0_i32 = arith.constant 0 : i32
    %c0_i32_0 = arith.constant 0 : i32
    %c0_i32_1 = arith.constant 0 : i32
    return %c0_i32, %c0_i32_0 : i32, i32
  }
  func.func @transform_5(%arg0: i32) -> (i32, i32) {
    %c0_i32 = arith.constant 0 : i32
    %c0_i32_0 = arith.constant 0 : i32
    %c0_i32_1 = arith.constant 0 : i32
    return %c0_i32, %c0_i32_0 : i32, i32
  }
  func.func @transform_6(%arg0: i32) -> (i32, i32) {
    %c0_i32 = arith.constant 0 : i32
    %c0_i32_0 = arith.constant 0 : i32
    %c0_i32_1 = arith.constant 0 : i32
    return %c0_i32, %c0_i32_0 : i32, i32
  }
  func.func @transform_7(%arg0: i32) -> (i32, i32) {
    %c0_i32 = arith.constant 0 : i32
    %c0_i32_0 = arith.constant 0 : i32
    %c0_i32_1 = arith.constant 0 : i32
    return %c0_i32, %c0_i32_0 : i32, i32
  }
}

</mosaic_0001>

<bundles_post_ra>
// kernel: tpu_custom_call.1
= control target key start
LH: loop header
LB: loop body
LE: loop exit
PB: predicated region body
PF: predicated region fallthrough
CT: control target
= control target key end

     0   :  { %vm162_vm0 = vcmask 1041408   ;;  %vm155_vm1 = vcmask 15360   ;;  %s897_s0 = inlined_call_operand.vmem [shape: f32[8,3], index: 0, kind: input, shape index: {}]   ;;  %s898_s1 = inlined_call_operand.vmem [shape: f32[16,32], index: 1, kind: input, shape index: {}]   ;;  %s899_s2 = inlined_call_operand.vmem [shape: f32[16,2], index: 2, kind: input, shape index: {}]   ;;  %s900_s3 = inlined_call_operand.vmem [shape: s32[2,16], index: 3, kind: input, shape index: {}]   ;;  %s901_s4 = inlined_call_operand.vmem [shape: f32[312,64], index: 4, kind: input, shape index: {}]   ;;  %s902_s5 = inlined_call_operand.hbm [shape: f32[16,32], index: 5, kind: output, shape index: {0}]   ;;  %s903_s6 = inlined_call_operand.vmem [shape: f32[16,2], index: 6, kind: output, shape index: {1}]   ;;  %s904_s7 = inlined_call_operand.vmem [shape: f32[8,2], index: 7, kind: output, shape index: {2}]  }
   0x1   :  { %v29_v0 = vld [vmem:[%s901_s4 + $0x28] sm:$0xff]  ;;  %v121_v2 = vld [vmem:[%s899_s2] sm:$0xff]  ;;  %v27_v4 = vld [vmem:[%s901_s4 + $0x18] sm:$0xff] }
   0x2   :  { %v25_v1 = vld [vmem:[%s901_s4 + $0x8] sm:$0x3]  ;;  %144 = vmatpush.msra.mxu1 %v29_v0  ;;  %v28_v3 = vld [vmem:[%s901_s4 + $0x20] sm:$0xff] }
   0x3   :  { %567 = vmatpush.msk.msra.mxu2 %vm162_vm0, %v25_v1 }
   0x4   :  { %568 = vmatmul.msk.f32.vlgmr.msra.gmra.mxu2 %vm155_vm1, %v121_v2  ;;  %145 = vmatpush.msra.mxu1 %v28_v3 }
   0x5   :  { %13 = vsyncpa [#allocation3], 0  ;;  %v26_v5 = vld [vmem:[%s901_s4 + $0x10] sm:$0xff]  ;;  %v123_v6 = vld [vmem:[%s898_s1] sm:$0xff]  ;;  %vm125_vm2 = vcmask 261120   ;;  %v64_v9 = vlaneseq  ;;  %vm97_vm3 = vcmask 1042432  }
   0x6   :  { %146 = vmatpush.msra.mxu1 %v27_v4  ;;  %v122_v7 = vld [vmem:[%s899_s2 + $0x8] sm:$0xff]  ;;  %v63_v10 = vld [vmem:[%s900_s3] sm:$0x3]  ;;  %vm93_vm4 = vcmask 23552   ;;  %vm75_vm6 = vcmask 130048   ;;  %v742_v21 = vld [vmem:[%s901_s4 + $0x130] sm:$0xff] }
   0x7   :  { %v124_v8 = vld [vmem:[%s898_s1 + $0x8] sm:$0xff]  ;;  %v65_v11 = vshrl.u32 %v64_v9, 7  ;;  %v729_v14 = vand.u32 127, %v64_v9  ;;  %v71_v15 = vcvt.s32.f32 %v63_v10  ;;  %v24_v16 = vld [vmem:[%s901_s4] sm:$0x7]  ;;  %v88_v22 = vperm.slane %v63_v10, 1 }
   0x8   :  { %147 = vmatpush.msra.mxu1 %v26_v5  ;;  %v91_v17 = vld [vmem:[%s897_s0] sm:$0xff]  ;;  %563 = vmatpush.msk.msra.mxu0 %vm97_vm3, %v24_v16  ;;  %v189_v27 = vperm.slane %v742_v21, 1  ;;  %v648_v30 = vmov 0.0   ;;  %v41_v32 = vld [vmem:[%s901_s4 + $0x88] sm:$0xff]  ;;  %v39_v34 = vld [vmem:[%s901_s4 + $0x78] sm:$0xff]  ;;  %s649_s8 = smov 32  }
   0x9   :  { %565 = vmatmul.msk.f32.vlgmr.msra.gmra.mxu1 %vm125_vm2, %v123_v6  ;;  %vm69_vm5 = vcmp.eq.s32.totalorder %v65_v11, %v729_v14  ;;  %v72_v18 = vperm.slane %v71_v15, 0  ;;  %564 = vmatmul.msk.f32.vlgmr.msra.gmra.mxu0 %vm93_vm4, %v91_v17  ;;  %vm89_vm7 = vcmp.eq.s32.totalorder %v65_v11, %v88_v22  ;;  %v40_v33 = vld [vmem:[%s901_s4 + $0x80] sm:$0xff]  ;;  %v38_v35 = vld [vmem:[%s901_s4 + $0x70] sm:$0xff]  ;;  %v66_v36 = vadd.s32 8, %v65_v11  ;;  %v37_v40 = vld [vmem:[%s901_s4 + $0x68] sm:$0xff]  ;;  %s650_s20 = smov 96  }
   0xa   :  { %v746_v31 = vsel %vm89_vm7, 1.0, %v648_v30  ;;  %v36_v41 = vld [vmem:[%s901_s4 + $0x60] sm:$0xff]  ;;  %294 = vmatpush.msrb.mxu2 %v37_v40  ;;  %v35_v42 = vld [vmem:[%s901_s4 + $0x58] sm:$0xff]  ;;  %v34_v43 = vld [vmem:[%s901_s4 + $0x50] sm:$0xff]  ;;  %v92_v52 = vperm.slane %v742_v21, 0  ;;  %vm220_vm12 = vcmask 64512  }
   0xb   :  { %v73_v19 = vsel %vm69_vm5, %v72_v18, 0.0  ;;  %vm70_vm8 = vcmp.eq.s32.totalorder %v66_v36, %v729_v14  ;;  %v33_v45 = vld [vmem:[%s901_s4 + $0x48] sm:$0xff]  ;;  %v32_v46 = vld [vmem:[%s901_s4 + $0x40] sm:$0xff]  ;;  %v31_v49 = vld [vmem:[%s901_s4 + $0x38] sm:$0xff]  ;;  %vm279_vm14 = vcmask 523264   ;;  %s651_s15 = smov [#allocation2]  }
   0xc   :  { %569 = vmatmul.msk.f32.gmra.mxu2 %vm155_vm1, %v122_v7  ;;  %v76_v20 = vsel %vm75_vm6, %v73_v19, 0.0  ;;  %v74_v37 = vsel %vm70_vm8, %v72_v18, 0.0  ;;  %v30_v0 = vld [vmem:[%s901_s4 + $0x30] sm:$0xff]  ;;  %v49_v1 = vld [vmem:[%s901_s4 + $0xc8] sm:$0xff]  ;;  %v48_v2 = vld [vmem:[%s901_s4 + $0xc0] sm:$0xff]  ;;  %s541_s16 = sshll.u32 %s651_s15, 4  ;;  %s542_s16 = int_to_ptr.vmem [resolvable:$true] %s541_s16 }
   0xd   :  { %77 = vadd.xlane.f32.xlu0 %v76_v20  ;;  %v79_v38 = vsel %vm75_vm6, %v74_v37, 0.0  ;;  %295 = vmatpush.msrb.mxu2 %v36_v41  ;;  %v47_v3 = vld [vmem:[%s901_s4 + $0xb8] sm:$0xff]  ;;  %v46_v4 = vld [vmem:[%s901_s4 + $0xb0] sm:$0xff]  ;;  %v45_v7 = vld [vmem:[%s901_s4 + $0xa8] sm:$0xff]  ;;  %s543_s19 = sshll.u32 %s902_s5, 4  ;;  %s654_s5 = smov 126   ;;  %s544_s19 = int_to_ptr.hbm [resolvable:$true] %s543_s19 }
   0xe   :  { %80 = vadd.xlane.f32.xlu1 %v79_v38  ;;  %333 = vmatpush.msrb.mxu1 %v49_v1  ;;  %v43_v9 = vld [vmem:[%s901_s4 + $0x98] sm:$0xff]  ;;  %v42_v10 = vld [vmem:[%s901_s4 + $0x90] sm:$0xff] }
   0xf   :  { %296 = vmatpush.msrb.mxu2 %v35_v42  ;;  %v58_v38 = vld [vmem:[%s901_s4 + $0x110] sm:$0xff] }
  0x10   :  { %334 = vmatpush.msrb.mxu1 %v48_v2 }
  0x11   :  { %566 = vmatmul.msk.f32.gmra.mxu1 %vm125_vm2, %v124_v8  ;;  %297 = vmatpush.msrb.mxu2 %v34_v43  ;;  %v44_v8 = vld [vmem:[%s901_s4 + $0xa0] sm:$0xff] }
  0x12   :  { %335 = vmatpush.msrb.mxu1 %v47_v3 }
  0x13   :  { %298 = vmatpush.msrb.mxu2 %v33_v45 }
  0x14   :  { %336 = vmatpush.msrb.mxu1 %v46_v4 }
  0x15   :  { %299 = vmatpush.msrb.mxu2 %v32_v46 }
  0x16   :  { %337 = vmatpush.msrb.mxu1 %v45_v7 }
  0x17   :  { %300 = vmatpush.msrb.mxu2 %v31_v49 }
  0x18   :  { %338 = vmatpush.msrb.mxu1 %v44_v8 }
  0x19   :  { %301 = vmatpush.msrb.mxu2 %v30_v0 }
  0x1a   :  { %339 = vmatpush.msrb.mxu1 %v43_v9 }
  0x1c   :  { %340 = vmatpush.msrb.mxu1 %v42_v10 }
  0x80   :  { %v78_v44 = vpop.xlane.xlu0 %77 }
  0x81   :  { %v594_v47 = vceil.f32 %v78_v44  ;;  %v595_v48 = vfloor.f32 %v78_v44  ;;  %vm593_vm9 = vcmp.lt.s32.totalorder %v78_v44, 0  ;;  %v81_v50 = vpop.xlane.xlu1 %80  ;;  %v52_v44 = vld [vmem:[%s901_s4 + $0xe0] sm:$0xff] }
  0x82   :  { %v599_v54 = vceil.f32 %v81_v50  ;;  %v600_v55 = vfloor.f32 %v81_v50  ;;  %vm598_vm10 = vcmp.lt.s32.totalorder %v81_v50, 0  ;;  %v874_v50 = vperm.slane %v742_v21, 5 }
  0x83   :  { %v596_v51 = vsel %vm593_vm9, %v594_v47, %v595_v48  ;;  %v56_v47 = vld [vmem:[%s901_s4 + $0x100] sm:$0xff]  ;;  %v55_v48 = vld [vmem:[%s901_s4 + $0xf8] sm:$0xff] }
  0x84   :  { %v597_v56 = vcvt.f32.s32 %v596_v51  ;;  %v601_v58 = vsel %vm598_vm10, %v599_v54, %v600_v55 }
  0x85   :  { %v602_v61 = vcvt.f32.s32 %v601_v58 }
  0x86   :  { %v149_v12 = vpop.f32.mrf.mxu1  ;;  %v118_v53 = vpop.f32.mrf.mxu0  ;;  %vm84_vm11 = vcmp.eq.s32.totalorder %v729_v14, %v597_v56 }
  0x87   :  { %v183_v13 = vpop.f32.mrf.mxu2  ;;  %v788_v57 = vadd.f32 %v118_v53, %v92_v52  ;;  %v86_v62 = vsel %vm84_vm11, 1.0, %v648_v30  ;;  %vm85_vm13 = vcmp.eq.s32.totalorder %v729_v14, %v602_v61 }
  0x88   :  { %v184_v25 = vadd.f32 %v183_v13, %v149_v12  ;;  %v87_v63 = vsel %vm85_vm13, 1.0, %v648_v30  ;;  %v309_v12 = vperm.slane %v742_v21, 2 }
  0x8a   :  { %v190_v29 = vadd.f32 %v189_v27, %v184_v25  ;;  %v61_v25 = vld [vmem:[%s901_s4 + $0x128] sm:$0xff] }
  0x8b   :  { %457 = vmatpush.msra.mxu2 %v61_v25 }
  0x8e   :  { %v152_v23 = vpop.f32.mrf.mxu1 }
  0x8f   :  { %v186_v24 = vpop.f32.mrf.mxu2 }
  0x90   :  { %v187_v26 = vadd.f32 %v186_v24, %v152_v23 }
  0x92   :  { %v191_v28 = vadd.f32 %v189_v27, %v187_v26  ;;  %v60_v26 = vld [vmem:[%s901_s4 + $0x120] sm:$0xff]  ;;  %v59_v27 = vld [vmem:[%s901_s4 + $0x118] sm:$0xff] }
  0x93   :  { %458 = vmatpush.msra.mxu2 %v60_v26 }
  0x94   :  { %209 = vmatpush.msra.mxu3 %v191_v28 }
  0x95   :  { %459 = vmatpush.msra.mxu2 %v59_v27 }
  0x96   :  { %210 = vmatpush.msra.mxu3 %v190_v29 }
  0x97   :  { %570 = vmatmul.msk.f32.vlgmr.msra.gmra.mxu3 %vm75_vm6, %v746_v31  ;;  %460 = vmatpush.msra.mxu2 %v58_v38 }
  0x98   :  { %268 = vmatpush.msrb.mxu3 %v41_v32 }
  0x9a   :  { %269 = vmatpush.msrb.mxu3 %v40_v33 }
  0x9c   :  { %270 = vmatpush.msrb.mxu3 %v39_v34 }
  0x9e   :  { %271 = vmatpush.msrb.mxu3 %v38_v35 }
  0x9f   :  { %573 = vmatmul.msk.f32.vlgmr.msrb.gmra.mxu3 %vm125_vm2, %v190_v29 }
  0xa0   :  { %585 = vmatpush.msra.mxu3 %v37_v40 }
  0xa2   :  { %586 = vmatpush.msra.mxu3 %v36_v41 }
  0xa4   :  { %587 = vmatpush.msra.mxu3 %v35_v42 }
  0xa6   :  { %588 = vmatpush.msra.mxu3 %v34_v43  ;;  %v53_v43 = vld [vmem:[%s901_s4 + $0xe8] sm:$0xff] }
  0xa7   :  { %574 = vmatmul.msk.f32.gmra.mxu3 %vm125_vm2, %v191_v28  ;;  %v318_v28 = vperm.slane %v742_v21, 3 }
  0xa8   :  { %589 = vmatpush.msra.mxu3 %v33_v45  ;;  %v51_v45 = vld [vmem:[%s901_s4 + $0xd8] sm:$0xff] }
  0xaa   :  { %590 = vmatpush.msra.mxu3 %v32_v46  ;;  %v50_v46 = vld [vmem:[%s901_s4 + $0xd0] sm:$0xff] }
  0xac   :  { %591 = vmatpush.msra.mxu3 %v31_v49  ;;  %v54_v49 = vld [vmem:[%s901_s4 + $0xf0] sm:$0xff] }
  0xae   :  { %592 = vmatpush.msra.mxu3 %v30_v0 }
 0x11a   :  { %v212_v39 = vpop.f32.mrf.mxu3 }
 0x11b   :  { %216 = vrot.lane.b32.xlu0 %v212_v39, %s649_s8 }
 0x122   :  { %v273_v11 = vpop.f32.mrf.mxu3 }
 0x12a   :  { %v276_v13 = vpop.f32.mrf.mxu3 }
 0x18d   :  { %v217_v59 = vpop.permute.xlu0 %216 }
 0x18e   :  { %v219_v60 = vsel %vm125_vm2, %v788_v57, %v217_v59 }
 0x18f   :  { %242 = vmatpush.msrb.mxu0 %v219_v60 }
 0x190   :  { %571 = vmatmul.msk.f32.vlgmr.msrb.gmra.mxu0 %vm220_vm12, %v86_v62 }
 0x198   :  { %572 = vmatmul.msk.f32.gmra.mxu0 %vm220_vm12, %v87_v63 }
 0x20d   :  { %v244_v5 = vpop.f32.mrf.mxu0 }
 0x20e   :  { %575 = vmatmul.msk.f32.vlgmr.msrb.gmra.mxu2 %vm279_vm14, %v244_v5 }
 0x215   :  { %v247_v6 = vpop.f32.mrf.mxu0 }
 0x216   :  { %576 = vmatmul.msk.f32.vlgmr.msra.gmra.mxu3 %vm279_vm14, %v247_v6 }
 0x291   :  { %v303_v14 = vpop.f32.mrf.mxu2 }
 0x292   :  { %v304_v15 = vadd.f32 %v303_v14, %v273_v11 }
 0x294   :  { %v310_v16 = vadd.f32 %v309_v12, %v304_v15 }
 0x296   :  { %v314_v17 = vmul.f32 0.01, %v310_v16  ;;  %vm312_vm15 = vcmp.gt.f32.partialorder %v310_v16, 0.0 }
 0x298   :  { %v316_v18 = vsel %vm312_vm15, %v310_v16, %v314_v17 }
 0x299   :  { %v306_v19 = vpop.f32.mrf.mxu3  ;;  %577 = vmatmul.msk.f32.vlgmr.msrb.gmra.mxu1 %vm279_vm14, %v316_v18 }
 0x29a   :  { %v307_v20 = vadd.f32 %v306_v19, %v276_v13 }
 0x29c   :  { %v311_v22 = vadd.f32 %v309_v12, %v307_v20  ;;  %v430_v20 = vperm.slane %v742_v21, 4 }
 0x29e   :  { %vm313_vm0 = vcmp.gt.f32.partialorder %v311_v22, 0.0  ;;  %v315_v23 = vmul.f32 0.01, %v311_v22 }
 0x2a0   :  { %v317_v24 = vsel %vm313_vm0, %v311_v22, %v315_v23 }
 0x2a1   :  { %578 = vmatmul.msk.f32.gmra.mxu1 %vm279_vm14, %v317_v24 }
 0x316   :  { %v342_v29 = vpop.f32.mrf.mxu1 }
 0x317   :  { %v343_v30 = vadd.f32 %v342_v29, %v318_v28 }
 0x319   :  { %vm348_vm3 = vcmp.gt.f32.partialorder %v343_v30, 0.0  ;;  %v350_v32 = vmul.f32 0.01, %v343_v30 }
 0x31b   :  { %v352_v33 = vsel %vm348_vm3, %v343_v30, %v350_v32 }
 0x31c   :  { %356 = vrot.lane.b32.xlu2 %v352_v33, %s650_s20 }
 0x31e   :  { %v345_v34 = vpop.f32.mrf.mxu1 }
 0x31f   :  { %v346_v35 = vadd.f32 %v345_v34, %v318_v28 }
 0x321   :  { %v351_v36 = vmul.f32 0.01, %v346_v35  ;;  %vm349_vm4 = vcmp.gt.f32.partialorder %v346_v35, 0.0 }
 0x323   :  { %v353_v37 = vsel %vm349_vm4, %v346_v35, %v351_v36 }
 0x324   :  { %358 = vrot.lane.b32.xlu1 %v353_v37, %s650_s20  ;;  %s653_s20 = smov 8  }
 0x376   :  { %v357_v39 = vpop.permute.xlu2 %356 }
 0x377   :  { %v362_v40 = vadd.f32 %v357_v39, %v352_v33 }
 0x379   :  { %528 = vst.msk [vmem:[#allocation2] sm:$0xff] %vm125_vm2, %v362_v40  ;;  %582 = vmatmul.msk.f32.vlgmr.msra.gmra.mxu2 %vm125_vm2, %v362_v40 }
 0x396   :  { %v359_v41 = vpop.permute.xlu1 %358 }
 0x397   :  { %v363_v42 = vadd.f32 %v359_v41, %v353_v37 }
 0x399   :  { %529 = vst.msk [vmem:[#allocation2 + $0x8] sm:$0xff] %vm125_vm2, %v363_v42  ;;  %378 = vmatpush.msra.mxu0 %v363_v42  ;;  %583 = vmatmul.msk.f32.gmra.mxu2 %vm125_vm2, %v363_v42 }
 0x39b   :  { %379 = vmatpush.msra.mxu0 %v362_v40 }
 0x39c   :  { %579 = vmatmul.msk.f32.vlgmr.msra.gmra.mxu0 %vm75_vm6, %v746_v31  ;;  %v57_v31 = vld [vmem:[%s901_s4 + $0x108] sm:$0xff] }
 0x39d   :  { %422 = vmatpush.msrb.mxu0 %v53_v43  ;;  %399 = vmatpush.msrb.mxu3 %v57_v31 }
 0x39f   :  { %423 = vmatpush.msrb.mxu0 %v52_v44  ;;  %400 = vmatpush.msrb.mxu3 %v56_v47 }
 0x3a1   :  { %424 = vmatpush.msrb.mxu0 %v51_v45  ;;  %401 = vmatpush.msrb.mxu3 %v55_v48 }
 0x3a3   :  { %425 = vmatpush.msrb.mxu0 %v50_v46  ;;  %402 = vmatpush.msrb.mxu3 %v54_v49 }
 0x3a4   :  { %581 = vmatmul.msk.f32.vlgmr.msrb.gmra.mxu0 %vm125_vm2, %v788_v57 }
 0x3fc   :  { %v462_v51 = vpop.f32.mrf.mxu2 }
 0x3fd   :  { %v463_v52 = vadd.f32 %v462_v51, %v874_v50 }
 0x3ff   :  { %v471_v53 = vsub.f32 0.0, %v463_v52 }
 0x401   :  { %v474_v54 = vmul.f32 1.442695, %v471_v53 }
 0x403   :  { %610 = vpow2.f32 %v474_v54 }
 0x409   :  { %v611_v55 = vpop.eup %610 }
 0x40a   :  { %v480_v56 = vadd.f32 1.0, %v611_v55 }
 0x40c   :  { %612 = vrcp.f32 %v480_v56  ;;  %v494_v60 = vand.u32 2147483648, %v480_v56  ;;  %v492_v62 = vand.u32 2147483647, %v480_v56  ;;  %vm488_vm6 = vweird.f32 %v480_v56 }
 0x40e   :  { %v495_v1 = vor.u32 1.1754944e-38, %v494_v60  ;;  %vm493_vm8 = vcmp.eq.f32.partialorder %v492_v62, 8.507059e+37 }
 0x412   :  { %v613_v57 = vpop.eup %612 }
 0x413   :  { %v484_v58 = vmul.f32 %v613_v57, %v480_v56  ;;  %vm489_vm5 = vweird.f32 %v613_v57 }
 0x414   :  { %vm490_vm7 = vmor %vm488_vm6, %vm489_vm5 }
 0x415   :  { %v485_v59 = vsub.f32 1.0, %v484_v58 }
 0x417   :  { %v486_v61 = vmul.f32 %v613_v57, %v485_v59 }
 0x419   :  { %v487_v63 = vadd.f32 %v613_v57, %v486_v61  ;;  %v381_v0 = vpop.f32.mrf.mxu0 }
 0x41a   :  { %580 = vmatmul.msk.f32.vlgmr.msrb.gmra.mxu3 %vm125_vm2, %v381_v0 }
 0x41b   :  { %v491_v2 = vsel %vm490_vm7, %v613_v57, %v487_v63 }
 0x41c   :  { %v496_v3 = vsel %vm493_vm8, %v495_v1, %v491_v2  ;;  %v465_v4 = vpop.f32.mrf.mxu2 }
 0x41d   :  { %530 = vst.msk [vmem:[%s903_s6] sm:$0xff] %vm155_vm1, %v496_v3  ;;  %v466_v5 = vadd.f32 %v465_v4, %v874_v50 }
 0x41f   :  { %v472_v6 = vsub.f32 0.0, %v466_v5 }
 0x421   :  { %v476_v7 = vmul.f32 1.442695, %v472_v6  ;;  %v427_v22 = vpop.f32.mrf.mxu0 }
 0x423   :  { %614 = vpow2.f32 %v476_v7 }
 0x429   :  { %v615_v8 = vpop.eup %614 }
 0x42a   :  { %v481_v9 = vadd.f32 1.0, %v615_v8 }
 0x42c   :  { %616 = vrcp.f32 %v481_v9  ;;  %v509_v13 = vand.u32 2147483648, %v481_v9  ;;  %v507_v15 = vand.u32 2147483647, %v481_v9  ;;  %vm503_vm10 = vweird.f32 %v481_v9 }
 0x42e   :  { %v510_v17 = vor.u32 1.1754944e-38, %v509_v13  ;;  %vm508_vm12 = vcmp.eq.f32.partialorder %v507_v15, 8.507059e+37 }
 0x432   :  { %v617_v10 = vpop.eup %616 }
 0x433   :  { %v499_v11 = vmul.f32 %v617_v10, %v481_v9  ;;  %vm504_vm9 = vweird.f32 %v617_v10 }
 0x434   :  { %vm505_vm11 = vmor %vm503_vm10, %vm504_vm9 }
 0x435   :  { %v500_v12 = vsub.f32 1.0, %v499_v11 }
 0x437   :  { %v501_v14 = vmul.f32 %v617_v10, %v500_v12 }
 0x439   :  { %v502_v16 = vadd.f32 %v617_v10, %v501_v14 }
 0x43b   :  { %v506_v18 = vsel %vm505_vm11, %v617_v10, %v502_v16 }
 0x43c   :  { %v511_v19 = vsel %vm508_vm12, %v510_v17, %v506_v18 }
 0x43d   :  { %531 = vst.msk [vmem:[%s903_s6 + $0x8] sm:$0xff] %vm155_vm1, %v511_v19  ;;  %s652_s6 = smov 128  }
 0x43e   :  { %549 = dma.vmem_to_hbm [thread:$0]  %s542_s16, 256, %s544_s19, [#allocation3], %s652_s6, %s652_s6, %s653_s20  }
 0x49d   :  { %v404_v23 = vpop.f32.mrf.mxu3 }
 0x49e   :  { %v428_v24 = vadd.f32 %v427_v22, %v404_v23 }
 0x4a0   :  { %v431_v25 = vadd.f32 %v430_v20, %v428_v24 }
 0x4a2   :  { %vm432_vm13 = vcmp.gt.f32.partialorder %v431_v25, 0.0  ;;  %v433_v26 = vmul.f32 0.01, %v431_v25 }
 0x4a4   :  { %v434_v27 = vsel %vm432_vm13, %v431_v25, %v433_v26 }
 0x4a5   :  { %584 = vmatmul.msk.f32.gmra.mxu2 %vm125_vm2, %v434_v27 }
 0x528   :  { %v468_v21 = vpop.f32.mrf.mxu2 }
 0x529   :  { %v469_v28 = vadd.f32 %v468_v21, %v874_v50 }
 0x52b   :  { %v473_v29 = vsub.f32 0.0, %v469_v28 }
 0x52d   :  { %v478_v30 = vmul.f32 1.442695, %v473_v29 }
 0x52f   :  { %618 = vpow2.f32 %v478_v30 }
 0x535   :  { %v619_v32 = vpop.eup %618 }
 0x536   :  { %v482_v33 = vadd.f32 1.0, %v619_v32 }
 0x538   :  { %620 = vrcp.f32 %v482_v33  ;;  %v524_v37 = vand.u32 2147483648, %v482_v33  ;;  %v522_v39 = vand.u32 2147483647, %v482_v33  ;;  %vm518_vm14 = vweird.f32 %v482_v33 }
 0x53a   :  { %v525_v41 = vor.u32 1.1754944e-38, %v524_v37  ;;  %vm523_vm0 = vcmp.eq.f32.partialorder %v522_v39, 8.507059e+37 }
 0x53e   :  { %v621_v34 = vpop.eup %620 }
 0x53f   :  { %v514_v35 = vmul.f32 %v621_v34, %v482_v33  ;;  %vm519_vm2 = vweird.f32 %v621_v34 }
 0x540   :  { %vm520_vm15 = vmor %vm518_vm14, %vm519_vm2 }
 0x541   :  { %v515_v36 = vsub.f32 1.0, %v514_v35 }
 0x543   :  { %v516_v38 = vmul.f32 %v621_v34, %v515_v36 }
 0x545   :  { %v517_v40 = vadd.f32 %v621_v34, %v516_v38 }
 0x547   :  { %v521_v42 = vsel %vm520_vm15, %v621_v34, %v517_v40 }
 0x548   :  { %v526_v43 = vsel %vm523_vm0, %v525_v41, %v521_v42 }
 0x549   :  { %533 = vrot.lane.b32.xlu2 %v526_v43, %s654_s5 }
 0x5a3   :  { %v534_v44 = vpop.permute.xlu2 %533 }
 0x5a4   :  { %536 = vst.msk [vmem:[%s904_s7] sm:$0xff] %vm155_vm1, %v534_v44 }
 0x5a5   :  { %646 = dma.done.wait [#allocation3], 256  }
 0x5a6   :  { %647 = vsyncadd [#allocation3], 4294967040 }
 0x5a7   :  { %562 = vsyncpa [#allocation3], 1 }

</bundles_post_ra>
